<compile_context>
chip_gen: v7x
topology: tpu7x:2x2x1
jax: 0.10.0
libtpu: 0.0.40
codegen_flags: <defaults>
</compile_context>

<pallas_src>
import functools
import math

import numpy as np

import jax
import jax.numpy as jnp
from jax import lax
from jax.experimental import pallas as pl
from jax.experimental.pallas import tpu as pltpu

_EPS = 1e-5


def _round_up(x, m):
    return ((x + m - 1) // m) * m


def _vmem_capacity_bytes():
    """Physical VMEM of the attached TPU (v5e/v6e: 128 MiB, v7x: 64 MiB/TC)."""
    try:
        return int(pltpu.get_tpu_info().vmem_capacity_bytes)
    except Exception:
        return 64 * 1024 * 1024  # conservative (v7x-sized) fallback


# ---------------------------------------------------------------------------
# Kernel A/B: tiled (optional BN-prenorm) Linear (+ optional ReLU) that also
# emits per-tile partial batch statistics (sum, sum-of-squares), so the wrapper
# can finalize whole-batch BatchNorm stats without another pass over the
# activations.
# ---------------------------------------------------------------------------
def _linear_bn_stats_kernel(x_ref, w_ref, b_ref, scale_ref, shift_ref,
                            h_ref, s_ref, q_ref,
                            *, apply_relu, apply_prenorm, center_on_bias,
                            n_valid, tile_n, need_mask):
    i = pl.program_id(0)
    x = x_ref[...].astype(jnp.float32)
    if apply_prenorm:
        # BN1 affine applied to the activation tile (2 VPU ops, hidden under
        # the MXU/DMA) instead of rescaling W2 in XLA on every call.
        x = x * scale_ref[...] + shift_ref[...]
    # For f32 operands force the accurate MXU path; for bf16 operands the
    # precision flag is irrelevant (single pass, f32 accumulation).
    prec = lax.Precision.HIGHEST if w_ref.dtype == jnp.float32 else None
    h = jnp.dot(x.astype(w_ref.dtype), w_ref[...], precision=prec,
                preferred_element_type=jnp.float32)
    h = h + b_ref[...]
    if apply_relu:
        h = jnp.maximum(h, 0.0)
    # Writeback may be bf16; statistics below always use the f32 accumulator.
    h_ref[...] = h.astype(h_ref.dtype)

    # Partial batch statistics. Centering on the bias (mean(h) ~ bias when the
    # layer input is batch-normalized) reduces E[x^2] - mean^2 cancellation.
    d = h - b_ref[...] if center_on_bias else h
    if need_mask:
        # Zero out padded rows so they do not pollute the batch statistics.
        row = i * tile_n + lax.broadcasted_iota(jnp.int32, d.shape, 0)
        d = jnp.where(row < n_valid, d, 0.0)
    fp = d.shape[-1]
    dg = d.reshape(tile_n // 8, 8, fp)   # pure VPU adds; wrapper finishes the 8-row reduce
    s_ref[...] = jnp.sum(dg, axis=0)
    q_ref[...] = jnp.sum(dg * dg, axis=0)


# ---------------------------------------------------------------------------
# Kernel C: y = ReLU( h2_pre * scale2 + shift2 + x )   (BN2 affine + residual)
# ---------------------------------------------------------------------------
def _bn_residual_relu_kernel(h2_ref, x_ref, scale_ref, shift_ref, o_ref):
    y = (h2_ref[...].astype(jnp.float32) * scale_ref[...]
         + shift_ref[...] + x_ref[...].astype(jnp.float32))
    o_ref[...] = jnp.maximum(y, 0.0).astype(o_ref.dtype)


def _linear_bn_stats_call(x_pad, w_pad, b_pad, scale, shift, *, apply_relu,
                          apply_prenorm, center_on_bias, n_valid, tile_n,
                          out_dtype, vmem_limit):
    np_, fp = x_pad.shape
    grid_n = np_ // tile_n
    kernel = functools.partial(
        _linear_bn_stats_kernel, apply_relu=apply_relu,
        apply_prenorm=apply_prenorm, center_on_bias=center_on_bias,
        n_valid=n_valid, tile_n=tile_n, need_mask=(n_valid != np_))
    out_isz = np.dtype(out_dtype).itemsize
    cost = pl.CostEstimate(
        flops=2 * np_ * fp * fp + 8 * np_ * fp,
        transcendentals=0,
        bytes_accessed=(x_pad.size * x_pad.dtype.itemsize
                        + w_pad.size * w_pad.dtype.itemsize
                        + np_ * fp * out_isz
                        + 2 * grid_n * 8 * fp * 4))
    return pl.pallas_call(
        kernel,
        grid=(grid_n,),
        in_specs=[
            pl.BlockSpec((tile_n, fp), lambda i: (i, 0)),   # activation tile
            pl.BlockSpec((fp, fp), lambda i: (0, 0)),       # weights stay resident
            pl.BlockSpec((1, fp), lambda i: (0, 0)),        # bias stays resident
            pl.BlockSpec((1, fp), lambda i: (0, 0)),        # BN pre-scale
            pl.BlockSpec((1, fp), lambda i: (0, 0)),        # BN pre-shift
        ],
        out_specs=[
            pl.BlockSpec((tile_n, fp), lambda i: (i, 0)),   # pre-BN activations
            pl.BlockSpec((8, fp), lambda i: (i, 0)),        # partial sums
            pl.BlockSpec((8, fp), lambda i: (i, 0)),        # partial sum-of-squares
        ],
        out_shape=[
            jax.ShapeDtypeStruct((np_, fp), out_dtype),
            jax.ShapeDtypeStruct((grid_n * 8, fp), jnp.float32),
            jax.ShapeDtypeStruct((grid_n * 8, fp), jnp.float32),
        ],
        compiler_params=pltpu.CompilerParams(
            dimension_semantics=("parallel",),
            vmem_limit_bytes=int(vmem_limit)),
        cost_estimate=cost,
    )(x_pad, w_pad, b_pad, scale, shift)


def residual_mlp_block(x, params, *, mxu_dtype=jnp.bfloat16, tile_n=None):
    """x: (bs, nbt, F) or (N, F). Returns same shape, f32, as the module."""
    orig_shape = x.shape
    has_tile_dim = x.ndim > 2
    x2d = x.reshape(-1, x.shape[-1]).astype(jnp.float32)
    n, f = x2d.shape

    # --- lane-dense feature padding (multiple of 128) + row-tile sizing ---
    fp = _round_up(max(f, 128), 128)
    row_align = 16 if np.dtype(mxu_dtype).itemsize < 4 else 8
    n_aligned = _round_up(n, row_align)

    vmem_phys = _vmem_capacity_bytes()
    # 96 MiB scoped on v5e/v6e (128 MiB physical), 48 MiB on v7x (64 MiB).
    vmem_limit = int(max(32 << 20, min(vmem_phys * 3 // 4, 96 << 20)))
    w_bytes = fp * fp * np.dtype(mxu_dtype).itemsize

    if tile_n is None:
        # Budget accounts for the DOUBLE-buffered resident weight (Pallas
        # allocates buffer_count=2 even with a constant index_map) plus margin.
        budget = vmem_limit - 2 * w_bytes - (4 << 20)
        per_row = 2 * fp * (4 + 4 + 4)          # 2 bufs x (in + resid + out), f32 worst case
        cap_rows = budget // per_row if budget > 0 else row_align
        # Keep >= 4 row tiles: both v7x TensorCores get work and DMAs pipeline.
        cap_cores = max(row_align, n_aligned // 4)
        tile_n = min(2048, max(row_align, cap_rows), cap_cores, n_aligned)
    # MXU-friendly rounding: prefer 256-row tiles, fall back to lane/pack minimum.
    tile_n = int(tile_n)
    for g in (256, 128, row_align):
        if tile_n >= g:
            tile_n = (tile_n // g) * g
            break
    tile_n = max(row_align, min(tile_n, n_aligned))
    np_ = _round_up(n, tile_n)
    grid_n = np_ // tile_n

    # Skip materializing a padded copy when shapes are already aligned.
    if np_ == n and fp == f:
        xp = x2d
    else:
        xp = jnp.pad(x2d, ((0, np_ - n), (0, fp - f)))

    def pad_mat(w):
        w = w.astype(jnp.float32)
        return w if fp == f else jnp.pad(w, ((0, fp - f), (0, fp - f)))

    def pad_vec(v):
        v = v.reshape(-1).astype(jnp.float32)
        return v if fp == f else jnp.pad(v, (0, fp - f))

    w1 = pad_mat(params["w1"]).astype(mxu_dtype)   # (in, out) = torch weight.T
    w2 = pad_mat(params["w2"]).astype(mxu_dtype)   # fixed; BN1 applied in-kernel
    b1 = pad_vec(params["b1"]).reshape(1, fp)
    b2 = pad_vec(params["b2"]).reshape(1, fp)
    g1, be1 = pad_vec(params["g1"]), pad_vec(params["beta1"])
    g2, be2 = pad_vec(params["g2"]), pad_vec(params["beta2"])

    ones = jnp.ones((1, fp), jnp.float32)
    zeros = jnp.zeros((1, fp), jnp.float32)
    inv_n = 1.0 / n

    # ---- pass 1: h1_pre = ReLU(x @ W1 + b1), plus partial batch stats ----
    h1, s1, q1 = _linear_bn_stats_call(
        xp, w1, b1, ones, zeros, apply_relu=True, apply_prenorm=False,
        center_on_bias=False, n_valid=n, tile_n=tile_n, out_dtype=mxu_dtype,
        vmem_limit=vmem_limit)
    mu1 = jnp.sum(s1, axis=0) * inv_n
    var1 = jnp.maximum(jnp.sum(q1, axis=0) * inv_n - mu1 * mu1, 0.0)
    sc1 = g1 * lax.rsqrt(var1 + _EPS)
    scale1 = sc1.reshape(1, fp)
    shift1 = (be1 - mu1 * sc1).reshape(1, fp)

    # ---- pass 2: h2_pre = BN1(h1) @ W2 + b2, plus partial batch stats ----
    # BN1 is applied to the h1 tile inside the kernel; W2 stays a fixed
    # resident bf16/f32 tile (no per-call W2 rescale in HBM).
    h2, s2, q2 = _linear_bn_stats_call(
        h1, w2, b2, scale1, shift1, apply_relu=False, apply_prenorm=True,
        center_on_bias=True, n_valid=n, tile_n=tile_n, out_dtype=mxu_dtype,
        vmem_limit=vmem_limit)
    m2 = jnp.sum(s2, axis=0) * inv_n               # stats were centered on b2
    mu2 = m2 + b2.reshape(-1)
    var2 = jnp.maximum(jnp.sum(q2, axis=0) * inv_n - m2 * m2, 0.0)
    sc2 = g2 * lax.rsqrt(var2 + _EPS)
    scale2 = sc2.reshape(1, fp)
    shift2 = (be2 - mu2 * sc2).reshape(1, fp)

    # ---- pass 3: y = ReLU(BN2(h2_pre) + x) ----
    out = pl.pallas_call(
        _bn_residual_relu_kernel,
        grid=(grid_n,),
        in_specs=[
            pl.BlockSpec((tile_n, fp), lambda i: (i, 0)),   # h2 (may be bf16)
            pl.BlockSpec((tile_n, fp), lambda i: (i, 0)),   # residual x
            pl.BlockSpec((1, fp), lambda i: (0, 0)),
            pl.BlockSpec((1, fp), lambda i: (0, 0)),
        ],
        out_specs=pl.BlockSpec((tile_n, fp), lambda i: (i, 0)),
        out_shape=jax.ShapeDtypeStruct((np_, fp), jnp.float32),
        compiler_params=pltpu.CompilerParams(
            dimension_semantics=("parallel",),
            vmem_limit_bytes=int(vmem_limit)),
        cost_estimate=pl.CostEstimate(
            flops=4 * np_ * fp, transcendentals=0,
            bytes_accessed=np_ * fp * (np.dtype(mxu_dtype).itemsize + 8)),
    )(h2, xp, scale2, shift2)

    if np_ != n or fp != f:
        out = out[:n, :f]
    return out.reshape(orig_shape) if has_tile_dim else out


def init_params(key, in_features):
    """Deterministic synthetic parameters matching the PyTorch module shapes."""
    f = in_features
    k = jax.random.split(key, 6)
    bound = 1.0 / math.sqrt(f)
    # Linear weights stored pre-transposed: (in_features, out_features).
    w1 = jax.random.uniform(k[0], (f, f), jnp.float32, -bound, bound)
    b1 = jax.random.uniform(k[1], (f,), jnp.float32, -bound, bound)
    w2 = jax.random.uniform(k[2], (f, f), jnp.float32, -bound, bound)
    b2 = jax.random.uniform(k[3], (f,), jnp.float32, -bound, bound)
    # BatchNorm1d affine params (perturbed so the affine path is exercised).
    g1 = 1.0 + 0.1 * jax.random.normal(k[4], (f,), jnp.float32)
    g2 = 1.0 + 0.1 * jax.random.normal(k[5], (f,), jnp.float32)
    return dict(w1=w1, b1=b1, g1=g1, beta1=jnp.zeros((f,), jnp.float32),
                w2=w2, b2=b2, g2=g2, beta2=jnp.zeros((f,), jnp.float32))


def _reference(x, p):
    """Pure-JAX f32 reference of the module forward pass."""
    hp = lax.Precision.HIGHEST
    x2 = x.reshape(-1, x.shape[-1]).astype(jnp.float32)
    h = jnp.maximum(jnp.dot(x2, p["w1"], precision=hp) + p["b1"], 0.0)
    h = (h - h.mean(0)) / jnp.sqrt(h.var(0) + _EPS) * p["g1"] + p["beta1"]
    h2 = jnp.dot(h, p["w2"], precision=hp) + p["b2"]
    h2 = (h2 - h2.mean(0)) / jnp.sqrt(h2.var(0) + _EPS) * p["g2"] + p["beta2"]
    return jnp.maximum(h2 + x2, 0.0).reshape(x.shape)


if __name__ == "__main__":
    key = jax.random.PRNGKey(0)
    kx1, kx2, kp = jax.random.split(key, 3)
    feat = 32
    params = init_params(kp, feat)

    fwd_f32 = jax.jit(functools.partial(residual_mlp_block,
                                        mxu_dtype=jnp.float32, tile_n=8))
    fwd_bf16 = jax.jit(functools.partial(residual_mlp_block,
                                         mxu_dtype=jnp.bfloat16))  # auto-tiled

    # Case 1: (bs, nbt, F) path, multiple row tiles, f32 MXU -> tight parity.
    x1 = jax.random.normal(kx1, (2, 8, feat), jnp.float32)
    y1 = jax.block_until_ready(fwd_f32(x1, params))
    r1 = _reference(x1, params)
    assert y1.shape == x1.shape and y1.dtype == jnp.float32
    assert jnp.allclose(y1, r1, atol=2e-3, rtol=2e-3), \
        float(jnp.max(jnp.abs(y1 - r1)))

    # Case 2: 2-D input path with a ragged batch (N=15 -> padded + masked rows).
    x2 = jax.random.normal(kx2, (15, feat), jnp.float32)
    y2 = jax.block_until_ready(fwd_f32(x2, params))
    r2 = _reference(x2, params)
    assert y2.shape == x2.shape
    assert jnp.allclose(y2, r2, atol=2e-3, rtol=2e-3), \
        float(jnp.max(jnp.abs(y2 - r2)))

    # Case 3: bf16 MXU-input fast path (auto tile sizing, bf16 h1/h2 writeback)
    # -> ballpark check vs f32 ref (exact parity established by the f32 runs).
    y3 = jax.block_until_ready(fwd_bf16(x1, params))
    assert y3.shape == x1.shape
    assert jnp.allclose(y3, r1, atol=1e-1, rtol=1e-1), \
        float(jnp.max(jnp.abs(y3 - r1)))

    print("KERNEL_OK")
</pallas_src>

<mosaic_0001>
module attributes {stable_mosaic.version = 11 : i64} {
  func.func @_linear_bn_stats_kernel(%arg0: i32, %arg1: memref<8x128xf32, #tpu.memory_space<vmem>>, %arg2: memref<128x128xf32, #tpu.memory_space<vmem>>, %arg3: memref<1x128xf32, #tpu.memory_space<vmem>>, %arg4: memref<1x128xf32, #tpu.memory_space<vmem>>, %arg5: memref<1x128xf32, #tpu.memory_space<vmem>>, %arg6: memref<8x128xf32, #tpu.memory_space<vmem>>, %arg7: memref<8x128xf32, #tpu.memory_space<vmem>>, %arg8: memref<8x128xf32, #tpu.memory_space<vmem>>) attributes {dimension_semantics = [#tpu.dimension_semantics<parallel>], iteration_bounds = array<i64: 2>, scalar_prefetch = 0 : i64, scratch_operands = 0 : i64, tpu.core_type = #tpu.core_type<tc>, window_params = [{transform_indices = @transform_0, window_bounds = array<i64: 8, 128>}, {pipeline_mode = #tpu.pipeline_mode<synchronous>, transform_indices = @transform_1, window_bounds = array<i64: 128, 128>}, {pipeline_mode = #tpu.pipeline_mode<synchronous>, transform_indices = @transform_2, window_bounds = array<i64: 1, 128>}, {pipeline_mode = #tpu.pipeline_mode<synchronous>, transform_indices = @transform_3, window_bounds = array<i64: 1, 128>}, {pipeline_mode = #tpu.pipeline_mode<synchronous>, transform_indices = @transform_4, window_bounds = array<i64: 1, 128>}, {transform_indices = @transform_5, window_bounds = array<i64: 8, 128>}, {transform_indices = @transform_6, window_bounds = array<i64: 8, 128>}, {transform_indices = @transform_7, window_bounds = array<i64: 8, 128>}]} {
    %c0 = arith.constant 0 : index
    %c0_0 = arith.constant 0 : index
    %0 = vector.load %arg1[%c0, %c0_0] : memref<8x128xf32, #tpu.memory_space<vmem>>, vector<8x128xf32>
    %c0_1 = arith.constant 0 : index
    %c0_2 = arith.constant 0 : index
    %1 = vector.load %arg2[%c0_1, %c0_2] : memref<128x128xf32, #tpu.memory_space<vmem>>, vector<128x128xf32>
    %cst = arith.constant dense<0.000000e+00> : vector<8x128xf32>
    %2 = tpu.matmul %0, %1, %cst {dimension_numbers = #tpu.dot_dimension_numbers<[1], [0], [0], [1], [0, 0, 1, 1], [], []>, precision = #tpu.contract_precision<fp32>} : vector<8x128xf32>, vector<128x128xf32>, vector<8x128xf32> -> vector<8x128xf32>
    %c0_3 = arith.constant 0 : index
    %c0_4 = arith.constant 0 : index
    %3 = vector.load %arg3[%c0_3, %c0_4] : memref<1x128xf32, #tpu.memory_space<vmem>>, vector<1x128xf32>
    %4 = vector.broadcast %3 : vector<1x128xf32> to vector<8x128xf32>
    %5 = arith.addf %2, %4 : vector<8x128xf32>
    %cst_5 = arith.constant 0.000000e+00 : f32
    %6 = vector.broadcast %cst_5 : f32 to vector<8x128xf32>
    %7 = arith.maximumf %5, %6 : vector<8x128xf32>
    %c0_6 = arith.constant 0 : index
    %c0_7 = arith.constant 0 : index
    %8 = vector.load %arg6[%c0_6, %c0_7] : memref<8x128xf32, #tpu.memory_space<vmem>>, vector<8x128xf32>
    tpu.vector_store %arg6[%c0_6, %c0_7], %7 {strides = array<i32>} : memref<8x128xf32, #tpu.memory_space<vmem>>, vector<8x128xf32>,
    %9 = vector.shape_cast %7 : vector<8x128xf32> to vector<1x8x128xf32>
    %cst_8 = arith.constant dense<0.000000e+00> : vector<8x128xf32>
    %10 = vector.multi_reduction <add>, %9, %cst_8 [0] : vector<1x8x128xf32> to vector<8x128xf32>
    %c0_9 = arith.constant 0 : index
    %c0_10 = arith.constant 0 : index
    %11 = vector.load %arg7[%c0_9, %c0_10] : memref<8x128xf32, #tpu.memory_space<vmem>>, vector<8x128xf32>
    tpu.vector_store %arg7[%c0_9, %c0_10], %10 {strides = array<i32>} : memref<8x128xf32, #tpu.memory_space<vmem>>, vector<8x128xf32>,
    %12 = arith.mulf %9, %9 : vector<1x8x128xf32>
    %cst_11 = arith.constant dense<0.000000e+00> : vector<8x128xf32>
    %13 = vector.multi_reduction <add>, %12, %cst_11 [0] : vector<1x8x128xf32> to vector<8x128xf32>
    %c0_12 = arith.constant 0 : index
    %c0_13 = arith.constant 0 : index
    %14 = vector.load %arg8[%c0_12, %c0_13] : memref<8x128xf32, #tpu.memory_space<vmem>>, vector<8x128xf32>
    tpu.vector_store %arg8[%c0_12, %c0_13], %13 {strides = array<i32>} : memref<8x128xf32, #tpu.memory_space<vmem>>, vector<8x128xf32>,
    return
  }
  func.func @transform_0(%arg0: i32) -> (i32, i32) {
    %c0_i32 = arith.constant 0 : i32
    %c0_i32_0 = arith.constant 0 : i32
    return %arg0, %c0_i32 : i32, i32
  }
  func.func @transform_1(%arg0: i32) -> (i32, i32) {
    %c0_i32 = arith.constant 0 : i32
    %c0_i32_0 = arith.constant 0 : i32
    %c0_i32_1 = arith.constant 0 : i32
    return %c0_i32, %c0_i32_0 : i32, i32
  }
  func.func @transform_2(%arg0: i32) -> (i32, i32) {
    %c0_i32 = arith.constant 0 : i32
    %c0_i32_0 = arith.constant 0 : i32
    %c0_i32_1 = arith.constant 0 : i32
    return %c0_i32, %c0_i32_0 : i32, i32
  }
  func.func @transform_3(%arg0: i32) -> (i32, i32) {
    %c0_i32 = arith.constant 0 : i32
    %c0_i32_0 = arith.constant 0 : i32
    %c0_i32_1 = arith.constant 0 : i32
    return %c0_i32, %c0_i32_0 : i32, i32
  }
  func.func @transform_4(%arg0: i32) -> (i32, i32) {
    %c0_i32 = arith.constant 0 : i32
    %c0_i32_0 = arith.constant 0 : i32
    %c0_i32_1 = arith.constant 0 : i32
    return %c0_i32, %c0_i32_0 : i32, i32
  }
  func.func @transform_5(%arg0: i32) -> (i32, i32) {
    %c0_i32 = arith.constant 0 : i32
    %c0_i32_0 = arith.constant 0 : i32
    return %arg0, %c0_i32 : i32, i32
  }
  func.func @transform_6(%arg0: i32) -> (i32, i32) {
    %c0_i32 = arith.constant 0 : i32
    %c0_i32_0 = arith.constant 0 : i32
    return %arg0, %c0_i32 : i32, i32
  }
  func.func @transform_7(%arg0: i32) -> (i32, i32) {
    %c0_i32 = arith.constant 0 : i32
    %c0_i32_0 = arith.constant 0 : i32
    return %arg0, %c0_i32 : i32, i32
  }
}

module attributes {stable_mosaic.version = 11 : i64} {
  func.func @_bn_residual_relu_kernel(%arg0: i32, %arg1: memref<8x128xf32, #tpu.memory_space<vmem>>, %arg2: memref<8x128xf32, #tpu.memory_space<vmem>>, %arg3: memref<1x128xf32, #tpu.memory_space<vmem>>, %arg4: memref<1x128xf32, #tpu.memory_space<vmem>>, %arg5: memref<8x128xf32, #tpu.memory_space<vmem>>) attributes {dimension_semantics = [#tpu.dimension_semantics<parallel>], iteration_bounds = array<i64: 2>, scalar_prefetch = 0 : i64, scratch_operands = 0 : i64, tpu.core_type = #tpu.core_type<tc>, window_params = [{transform_indices = @transform_0, window_bounds = array<i64: 8, 128>}, {transform_indices = @transform_1, window_bounds = array<i64: 8, 128>}, {pipeline_mode = #tpu.pipeline_mode<synchronous>, transform_indices = @transform_2, window_bounds = array<i64: 1, 128>}, {pipeline_mode = #tpu.pipeline_mode<synchronous>, transform_indices = @transform_3, window_bounds = array<i64: 1, 128>}, {transform_indices = @transform_4, window_bounds = array<i64: 8, 128>}]} {
    %c0 = arith.constant 0 : index
    %c0_0 = arith.constant 0 : index
    %0 = vector.load %arg1[%c0, %c0_0] : memref<8x128xf32, #tpu.memory_space<vmem>>, vector<8x128xf32>
    %c0_1 = arith.constant 0 : index
    %c0_2 = arith.constant 0 : index
    %1 = vector.load %arg3[%c0_1, %c0_2] : memref<1x128xf32, #tpu.memory_space<vmem>>, vector<1x128xf32>
    %2 = vector.broadcast %1 : vector<1x128xf32> to vector<8x128xf32>
    %3 = arith.mulf %0, %2 : vector<8x128xf32>
    %c0_3 = arith.constant 0 : index
    %c0_4 = arith.constant 0 : index
    %4 = vector.load %arg4[%c0_3, %c0_4] : memref<1x128xf32, #tpu.memory_space<vmem>>, vector<1x128xf32>
    %5 = vector.broadcast %4 : vector<1x128xf32> to vector<8x128xf32>
    %6 = arith.addf %3, %5 : vector<8x128xf32>
    %c0_5 = arith.constant 0 : index
    %c0_6 = arith.constant 0 : index
    %7 = vector.load %arg2[%c0_5, %c0_6] : memref<8x128xf32, #tpu.memory_space<vmem>>, vector<8x128xf32>
    %8 = arith.addf %6, %7 : vector<8x128xf32>
    %cst = arith.constant 0.000000e+00 : f32
    %9 = vector.broadcast %cst : f32 to vector<8x128xf32>
    %10 = arith.maximumf %8, %9 : vector<8x128xf32>
    %c0_7 = arith.constant 0 : index
    %c0_8 = arith.constant 0 : index
    %11 = vector.load %arg5[%c0_7, %c0_8] : memref<8x128xf32, #tpu.memory_space<vmem>>, vector<8x128xf32>
    tpu.vector_store %arg5[%c0_7, %c0_8], %10 {strides = array<i32>} : memref<8x128xf32, #tpu.memory_space<vmem>>, vector<8x128xf32>,
    return
  }
  func.func @transform_0(%arg0: i32) -> (i32, i32) {
    %c0_i32 = arith.constant 0 : i32
    %c0_i32_0 = arith.constant 0 : i32
    return %arg0, %c0_i32 : i32, i32
  }
  func.func @transform_1(%arg0: i32) -> (i32, i32) {
    %c0_i32 = arith.constant 0 : i32
    %c0_i32_0 = arith.constant 0 : i32
    return %arg0, %c0_i32 : i32, i32
  }
  func.func @transform_2(%arg0: i32) -> (i32, i32) {
    %c0_i32 = arith.constant 0 : i32
    %c0_i32_0 = arith.constant 0 : i32
    %c0_i32_1 = arith.constant 0 : i32
    return %c0_i32, %c0_i32_0 : i32, i32
  }
  func.func @transform_3(%arg0: i32) -> (i32, i32) {
    %c0_i32 = arith.constant 0 : i32
    %c0_i32_0 = arith.constant 0 : i32
    %c0_i32_1 = arith.constant 0 : i32
    return %c0_i32, %c0_i32_0 : i32, i32
  }
  func.func @transform_4(%arg0: i32) -> (i32, i32) {
    %c0_i32 = arith.constant 0 : i32
    %c0_i32_0 = arith.constant 0 : i32
    return %arg0, %c0_i32 : i32, i32
  }
}

module attributes {stable_mosaic.version = 11 : i64} {
  func.func @_linear_bn_stats_kernel(%arg0: i32, %arg1: memref<8x128xf32, #tpu.memory_space<vmem>>, %arg2: memref<128x128xf32, #tpu.memory_space<vmem>>, %arg3: memref<1x128xf32, #tpu.memory_space<vmem>>, %arg4: memref<1x128xf32, #tpu.memory_space<vmem>>, %arg5: memref<1x128xf32, #tpu.memory_space<vmem>>, %arg6: memref<8x128xf32, #tpu.memory_space<vmem>>, %arg7: memref<8x128xf32, #tpu.memory_space<vmem>>, %arg8: memref<8x128xf32, #tpu.memory_space<vmem>>) attributes {dimension_semantics = [#tpu.dimension_semantics<parallel>], iteration_bounds = array<i64: 2>, scalar_prefetch = 0 : i64, scratch_operands = 0 : i64, tpu.core_type = #tpu.core_type<tc>, window_params = [{transform_indices = @transform_0, window_bounds = array<i64: 8, 128>}, {pipeline_mode = #tpu.pipeline_mode<synchronous>, transform_indices = @transform_1, window_bounds = array<i64: 128, 128>}, {pipeline_mode = #tpu.pipeline_mode<synchronous>, transform_indices = @transform_2, window_bounds = array<i64: 1, 128>}, {pipeline_mode = #tpu.pipeline_mode<synchronous>, transform_indices = @transform_3, window_bounds = array<i64: 1, 128>}, {pipeline_mode = #tpu.pipeline_mode<synchronous>, transform_indices = @transform_4, window_bounds = array<i64: 1, 128>}, {transform_indices = @transform_5, window_bounds = array<i64: 8, 128>}, {transform_indices = @transform_6, window_bounds = array<i64: 8, 128>}, {transform_indices = @transform_7, window_bounds = array<i64: 8, 128>}]} {
    %c0 = arith.constant 0 : index
    %c0_0 = arith.constant 0 : index
    %0 = vector.load %arg1[%c0, %c0_0] : memref<8x128xf32, #tpu.memory_space<vmem>>, vector<8x128xf32>
    %c0_1 = arith.constant 0 : index
    %c0_2 = arith.constant 0 : index
    %1 = vector.load %arg4[%c0_1, %c0_2] : memref<1x128xf32, #tpu.memory_space<vmem>>, vector<1x128xf32>
    %2 = vector.broadcast %1 : vector<1x128xf32> to vector<8x128xf32>
    %3 = arith.mulf %0, %2 : vector<8x128xf32>
    %c0_3 = arith.constant 0 : index
    %c0_4 = arith.constant 0 : index
    %4 = vector.load %arg5[%c0_3, %c0_4] : memref<1x128xf32, #tpu.memory_space<vmem>>, vector<1x128xf32>
    %5 = vector.broadcast %4 : vector<1x128xf32> to vector<8x128xf32>
    %6 = arith.addf %3, %5 : vector<8x128xf32>
    %c0_5 = arith.constant 0 : index
    %c0_6 = arith.constant 0 : index
    %7 = vector.load %arg2[%c0_5, %c0_6] : memref<128x128xf32, #tpu.memory_space<vmem>>, vector<128x128xf32>
    %cst = arith.constant dense<0.000000e+00> : vector<8x128xf32>
    %8 = tpu.matmul %6, %7, %cst {dimension_numbers = #tpu.dot_dimension_numbers<[1], [0], [0], [1], [0, 0, 1, 1], [], []>, precision = #tpu.contract_precision<fp32>} : vector<8x128xf32>, vector<128x128xf32>, vector<8x128xf32> -> vector<8x128xf32>
    %c0_7 = arith.constant 0 : index
    %c0_8 = arith.constant 0 : index
    %9 = vector.load %arg3[%c0_7, %c0_8] : memref<1x128xf32, #tpu.memory_space<vmem>>, vector<1x128xf32>
    %10 = vector.broadcast %9 : vector<1x128xf32> to vector<8x128xf32>
    %11 = arith.addf %8, %10 : vector<8x128xf32>
    %c0_9 = arith.constant 0 : index
    %c0_10 = arith.constant 0 : index
    %12 = vector.load %arg6[%c0_9, %c0_10] : memref<8x128xf32, #tpu.memory_space<vmem>>, vector<8x128xf32>
    tpu.vector_store %arg6[%c0_9, %c0_10], %11 {strides = array<i32>} : memref<8x128xf32, #tpu.memory_space<vmem>>, vector<8x128xf32>,
    %c0_11 = arith.constant 0 : index
    %c0_12 = arith.constant 0 : index
    %13 = vector.load %arg3[%c0_11, %c0_12] : memref<1x128xf32, #tpu.memory_space<vmem>>, vector<1x128xf32>
    %14 = vector.broadcast %13 : vector<1x128xf32> to vector<8x128xf32>
    %15 = arith.subf %11, %14 : vector<8x128xf32>
    %16 = vector.shape_cast %15 : vector<8x128xf32> to vector<1x8x128xf32>
    %cst_13 = arith.constant dense<0.000000e+00> : vector<8x128xf32>
    %17 = vector.multi_reduction <add>, %16, %cst_13 [0] : vector<1x8x128xf32> to vector<8x128xf32>
    %c0_14 = arith.constant 0 : index
    %c0_15 = arith.constant 0 : index
    %18 = vector.load %arg7[%c0_14, %c0_15] : memref<8x128xf32, #tpu.memory_space<vmem>>, vector<8x128xf32>
    tpu.vector_store %arg7[%c0_14, %c0_15], %17 {strides = array<i32>} : memref<8x128xf32, #tpu.memory_space<vmem>>, vector<8x128xf32>,
    %19 = arith.mulf %16, %16 : vector<1x8x128xf32>
    %cst_16 = arith.constant dense<0.000000e+00> : vector<8x128xf32>
    %20 = vector.multi_reduction <add>, %19, %cst_16 [0] : vector<1x8x128xf32> to vector<8x128xf32>
    %c0_17 = arith.constant 0 : index
    %c0_18 = arith.constant 0 : index
    %21 = vector.load %arg8[%c0_17, %c0_18] : memref<8x128xf32, #tpu.memory_space<vmem>>, vector<8x128xf32>
    tpu.vector_store %arg8[%c0_17, %c0_18], %20 {strides = array<i32>} : memref<8x128xf32, #tpu.memory_space<vmem>>, vector<8x128xf32>,
    return
  }
  func.func @transform_0(%arg0: i32) -> (i32, i32) {
    %c0_i32 = arith.constant 0 : i32
    %c0_i32_0 = arith.constant 0 : i32
    return %arg0, %c0_i32 : i32, i32
  }
  func.func @transform_1(%arg0: i32) -> (i32, i32) {
    %c0_i32 = arith.constant 0 : i32
    %c0_i32_0 = arith.constant 0 : i32
    %c0_i32_1 = arith.constant 0 : i32
    return %c0_i32, %c0_i32_0 : i32, i32
  }
  func.func @transform_2(%arg0: i32) -> (i32, i32) {
    %c0_i32 = arith.constant 0 : i32
    %c0_i32_0 = arith.constant 0 : i32
    %c0_i32_1 = arith.constant 0 : i32
    return %c0_i32, %c0_i32_0 : i32, i32
  }
  func.func @transform_3(%arg0: i32) -> (i32, i32) {
    %c0_i32 = arith.constant 0 : i32
    %c0_i32_0 = arith.constant 0 : i32
    %c0_i32_1 = arith.constant 0 : i32
    return %c0_i32, %c0_i32_0 : i32, i32
  }
  func.func @transform_4(%arg0: i32) -> (i32, i32) {
    %c0_i32 = arith.constant 0 : i32
    %c0_i32_0 = arith.constant 0 : i32
    %c0_i32_1 = arith.constant 0 : i32
    return %c0_i32, %c0_i32_0 : i32, i32
  }
  func.func @transform_5(%arg0: i32) -> (i32, i32) {
    %c0_i32 = arith.constant 0 : i32
    %c0_i32_0 = arith.constant 0 : i32
    return %arg0, %c0_i32 : i32, i32
  }
  func.func @transform_6(%arg0: i32) -> (i32, i32) {
    %c0_i32 = arith.constant 0 : i32
    %c0_i32_0 = arith.constant 0 : i32
    return %arg0, %c0_i32 : i32, i32
  }
  func.func @transform_7(%arg0: i32) -> (i32, i32) {
    %c0_i32 = arith.constant 0 : i32
    %c0_i32_0 = arith.constant 0 : i32
    return %arg0, %c0_i32 : i32, i32
  }
}

</mosaic_0001>

<bundles_post_ra>
// kernel: residual_mlp_block.5
= control target key start
LH: loop header
LB: loop body
LE: loop exit
PB: predicated region body
PF: predicated region fallthrough
CT: control target
= control target key end

     0   :  { %s320_s15 = smov 0   ;;  %s364_s0 = inlined_call_operand.vmem [shape: f32[16,128], index: 0, kind: input, shape index: {}]   ;;  %s365_s1 = inlined_call_operand.vmem [shape: f32[16,128], index: 1, kind: input, shape index: {}]   ;;  %s366_s2 = inlined_call_operand.vmem [shape: f32[1,128], index: 2, kind: input, shape index: {}]   ;;  %s367_s3 = inlined_call_operand.vmem [shape: f32[1,128], index: 3, kind: input, shape index: {}]   ;;  %s368_s4 = inlined_call_operand.vmem [shape: f32[16,128], index: 4, kind: output, shape index: {}]  }
   0x1 LB: > { %s296_s16 = sadd.s32 4294967295, %s322_s15   ;;  %p300_p0 = scmp.ge.s32.totalorder %s322_s15, 1  ;;  %s322_s15 = sphi %s320_s15, %s14_s15  }
   0x2   : > { %p170_p1 = scmp.lt.s32.totalorder %s322_s15, 3 }
   0x4   : > { %p171_p2 = pnand %p300_p0, %p170_p1 }
   0x5   : > { %p198_p3 = scmp.lt.s32.totalorder (!%p171_p2), %s296_s16, 1  ;;  %v304_v0 = vld [vmem:[%s366_s2] ss:$0 sm:$0xff] (!%p171_p2) }
   0x6   : > { %174 = sbr.rel (%p171_p2) target bundleno = 26 (0x1a), region = 36  ;;  %v305_v2 = vld [vmem:[%s367_s3] ss:$0 sm:$0xff] (!%p171_p2) }
   0xd   : > { %s370_s16 = smov (!%p198_p3, %s296_s16), 1 }
   0xe   : > { %s301_s17 = sshll.u32 %s370_s16, 3 }
   0xf   : > { %s201_s22 = scalar_lea.vmem %s364_s0, %s301_s17  ;;  %s205_s25 = scalar_lea.vmem %s365_s1, %s301_s17 }
  0x10   : > { %v210_v1 = vld [vmem:[%s201_s22] sm:$0xff]  ;;  %s209_s30 = scalar_lea.vmem %s368_s4, %s301_s17 }
  0x11   : > { %v218_v3 = vmul.f32 %v304_v0, %v210_v1  ;;  %v227_v4 = vld [vmem:[%s205_s25] sm:$0xff] }
  0x13   : > { %v226_v5 = vadd.f32 %v305_v2, %v218_v3 }
  0x15   : > { %v228_v6 = vadd.f32 %v227_v4, %v226_v5 }
  0x17   : > { %v229_v7 = vmax.f32 %v228_v6, 0.0 }
  0x19   : > { %230 = vst [vmem:[%s209_s30] sm:$0xff] %v229_v7 }
  0x1a PF: > { %s14_s15 = sadd.s32 1, %s322_s15  }
  0x1b   : > { %p11_p4 = scmp.ge.s32.totalorder %s14_s15, 4  }
  0x1d   :  { %13 = sbr.rel (!%p11_p4) target bundleno = 1 (0x1), region = 69 }

// kernel: residual_mlp_block.4
= control target key start
LH: loop header
LB: loop body
LE: loop exit
PB: predicated region body
PF: predicated region fallthrough
CT: control target
= control target key end

     0   :  { %s1648_s24 = smov 0   ;;  %s2001_s0 = inlined_call_operand.vmem [shape: f32[16,128], index: 0, kind: input, shape index: {}]   ;;  %s2002_s1 = inlined_call_operand.vmem [shape: f32[128,128], index: 1, kind: input, shape index: {}]   ;;  %s2003_s2 = inlined_call_operand.vmem [shape: f32[1,128], index: 2, kind: input, shape index: {}]   ;;  %s2004_s3 = inlined_call_operand.vmem [shape: f32[1,128], index: 3, kind: input, shape index: {}]   ;;  %s2005_s4 = inlined_call_operand.vmem [shape: f32[1,128], index: 4, kind: input, shape index: {}]   ;;  %s2006_s5 = inlined_call_operand.vmem [shape: f32[16,128], index: 5, kind: output, shape index: {0}]   ;;  %s2007_s6 = inlined_call_operand.vmem [shape: f32[16,128], index: 6, kind: output, shape index: {1}]   ;;  %s2008_s7 = inlined_call_operand.vmem [shape: f32[16,128], index: 7, kind: output, shape index: {2}]  }
   0x1 LB: > { %s1105_s25 = sadd.s32 4294967295, %s1603_s24   ;;  %p1109_p0 = scmp.ge.s32.totalorder %s1603_s24, 1  ;;  %s1603_s24 = sphi %s1648_s24, %s18_s24  }
   0x2   : > { %p241_p1 = scmp.lt.s32.totalorder %s1603_s24, 3 }
   0x4   : > { %p242_p2 = pnand %p1109_p0, %p241_p1 }
   0x5   : > { %v312_v0 = vld [vmem:[%s2002_s1] sm:$0xff] (!%p242_p2)  ;;  %v313_v1 = vld [vmem:[%s2002_s1 + $0x8] sm:$0xff] (!%p242_p2)  ;;  %v1665_v2 = vld [vmem:[%s2002_s1 + $0x10] sm:$0xff] (!%p242_p2)  ;;  %v1605_v3 = vmov (!%p242_p2), 0.0|0.0   ;;  %vm1606_vm0 = vmmov (!%p242_p2), 0   ;;  %v1607_v11 = vmov (!%p242_p2), 0.0  }
   0x6   : > { %245 = sbr.rel (%p242_p2) target bundleno = 326 (0x146), region = 40  ;;  %1432 = vmatprep.subr.bf16.mxu1 (!%p242_p2), %v1605_v3  ;;  %1504 = vmatprep.subr.bf16.mxu0 (!%p242_p2), %v1605_v3  ;;  %v336_v4 = vand.u32 (!%p242_p2), 4294901760, %v312_v0  ;;  %v339_v5 = vand.u32 (!%p242_p2), 4294901760, %v313_v1  ;;  %v315_v6 = vld [vmem:[%s2002_s1 + $0x18] sm:$0xff] (!%p242_p2)  ;;  %v342_v7 = vand.u32 (!%p242_p2), 4294901760, %v1665_v2  ;;  %v1676_v9 = vld [vmem:[%s2002_s1 + $0x20] sm:$0xff] (!%p242_p2) }
   0x7   : > { %v345_v8 = vand.u32 (!%p242_p2), 4294901760, %v315_v6  ;;  %v1681_v10 = vld [vmem:[%s2002_s1 + $0x28] sm:$0xff] (!%p242_p2)  ;;  %1254 = vmatprep.mubr.msk.f32.mxu1 (!%p242_p2), %vm1606_vm0, %v1607_v11  ;;  %1359 = vmatprep.mubr.msk.f32.mxu0 (!%p242_p2), %vm1606_vm0, %v1607_v11  ;;  %p279_p3 = scmp.lt.s32.totalorder (!%p242_p2), %s1105_s25, 1  ;;  %v348_v14 = vand.u32 (!%p242_p2), 4294901760, %v1676_v9  ;;  %v1700_v16 = vld [vmem:[%s2002_s1 + $0x30] sm:$0xff] (!%p242_p2)  ;;  %v1705_v17 = vld [vmem:[%s2002_s1 + $0x38] sm:$0xff] (!%p242_p2) }
   0x8   : > { %v1687_v12 = vpack.c.bf16 (!%p242_p2), %v339_v5, %v336_v4  ;;  %v351_v15 = vand.u32 (!%p242_p2), 4294901760, %v1681_v10  ;;  %v1114_v18 = vld [vmem:[%s2004_s3] ss:$0 sm:$0xff] (!%p242_p2)  ;;  %v354_v20 = vand.u32 (!%p242_p2), 4294901760, %v1700_v16  ;;  %v357_v21 = vand.u32 (!%p242_p2), 4294901760, %v1705_v17  ;;  %v1735_v25 = vld [vmem:[%s2002_s1 + $0x48] sm:$0xff] (!%p242_p2) }
   0x9   : > { %v1691_v13 = vpack.c.bf16 (!%p242_p2), %v345_v8, %v342_v7  ;;  %v1115_v23 = vld [vmem:[%s2005_s4] ss:$0 sm:$0xff] (!%p242_p2)  ;;  %v363_v30 = vand.u32 (!%p242_p2), 4294901760, %v1735_v25  ;;  %v1748_v31 = vld [vmem:[%s2002_s1 + $0x50] sm:$0xff] (!%p242_p2)  ;;  %v1753_v32 = vld [vmem:[%s2002_s1 + $0x58] sm:$0xff] (!%p242_p2)  ;;  %v1755_v33 = vsub.f32 (!%p242_p2), %v312_v0, %v336_v4  ;;  %v1759_v35 = vsub.f32 (!%p242_p2), %v313_v1, %v339_v5 }
   0xa   : > { %1434 = vmatpush3.bf16.msra.mxu1 (!%p242_p2), %v1687_v12  ;;  %1506 = vmatpush3.bf16.msra.mxu0 (!%p242_p2), %v1687_v12  ;;  %v1718_v19 = vpack.c.bf16 (!%p242_p2), %v351_v15, %v348_v14  ;;  %v1730_v24 = vld [vmem:[%s2002_s1 + $0x40] sm:$0xff] (!%p242_p2)  ;;  %v1739_v28 = vpack.c.bf16 (!%p242_p2), %v357_v21, %v354_v20  ;;  %v366_v37 = vand.u32 (!%p242_p2), 4294901760, %v1748_v31  ;;  %v369_v38 = vand.u32 (!%p242_p2), 4294901760, %v1753_v32  ;;  %v1777_v40 = vld [vmem:[%s2002_s1 + $0x68] sm:$0xff] (!%p242_p2)  ;;  %v1800_v47 = vld [vmem:[%s2002_s1 + $0x70] sm:$0xff] (!%p242_p2) }
   0xb   : > { %1435 = vmatprep.subr.bf16.mxu1 (!%p242_p2), %v1605_v3  ;;  %1507 = vmatprep.subr.bf16.mxu0 (!%p242_p2), %v1605_v3  ;;  %v360_v29 = vand.u32 (!%p242_p2), 4294901760, %v1730_v24  ;;  %v1770_v39 = vld [vmem:[%s2002_s1 + $0x60] sm:$0xff] (!%p242_p2)  ;;  %v1780_v41 = vsub.f32 (!%p242_p2), %v1665_v2, %v342_v7  ;;  %v1782_v42 = vsub.f32 (!%p242_p2), %v315_v6, %v345_v8  ;;  %v375_v46 = vand.u32 (!%p242_p2), 4294901760, %v1777_v40  ;;  %v1805_v48 = vld [vmem:[%s2002_s1 + $0x78] sm:$0xff] (!%p242_p2) }
   0xc   : > { %v372_v43 = vand.u32 (!%p242_p2), 4294901760, %v1770_v39  ;;  %v1794_v45 = vpack.c.bf16 (!%p242_p2), %v369_v38, %v366_v37  ;;  %v429_v49 = vand.u32 (!%p242_p2), 4294901760, %v1755_v33  ;;  %v436_v50 = vand.u32 (!%p242_p2), 4294901760, %v1759_v35 }
   0xd   : > { %s2010_s25 = smov (!%p279_p3, %s1105_s25), 1  ;;  %v1763_v36 = vpack.c.bf16 %v363_v30, %v360_v29  ;;  %v1812_v51 = vsub.f32 %v1676_v9, %v348_v14  ;;  %v1815_v52 = vsub.f32 %v1681_v10, %v351_v15  ;;  %v378_v53 = vand.u32 4294901760, %v1800_v47 }
   0xe   : > { %s1707_s19 = sshll.u32 %s2010_s25, 3  ;;  %1437 = vmatpush3.bf16.msra.mxu1 %v1691_v13  ;;  %1509 = vmatpush3.bf16.msra.mxu0 %v1691_v13  ;;  %v381_v54 = vand.u32 4294901760, %v1805_v48  ;;  %v443_v56 = vand.u32 4294901760, %v1780_v41  ;;  %v1827_v57 = vpack.c.bf16 %v375_v46, %v372_v43  ;;  %v430_v58 = vsub.f32 %v1755_v33, %v429_v49 }
   0xf   : > { %s282_s26 = scalar_lea.vmem %s2001_s0, %s1707_s19  ;;  %1438 = vmatprep.subr.bf16.mxu1 %v1605_v3  ;;  %1510 = vmatprep.subr.bf16.mxu0 %v1605_v3  ;;  %v437_v59 = vsub.f32 %v1759_v35, %v436_v50  ;;  %v450_v60 = vand.u32 4294901760, %v1782_v42  ;;  %v1835_v61 = vsub.f32 %v1700_v16, %v354_v20  ;;  %v1838_v62 = vsub.f32 %v1705_v17, %v357_v21  ;;  %s286_s27 = scalar_lea.vmem %s2006_s5, %s1707_s19 }
  0x10   : > { %v295_v22 = vld [vmem:[%s282_s26] sm:$0xff]  ;;  %v444_v0 = vsub.f32 %v1780_v41, %v443_v56  ;;  %v457_v1 = vand.u32 4294901760, %v1812_v51  ;;  %v464_v2 = vand.u32 4294901760, %v1815_v52  ;;  %v1850_v4 = vpack.c.bf16 %v381_v54, %v378_v53  ;;  %s290_s30 = scalar_lea.vmem %s2007_s6, %s1707_s19  ;;  %s294_s10 = scalar_lea.vmem %s2008_s7, %s1707_s19 }
  0x11   : > { %v303_v26 = vmul.f32 %v1114_v18, %v295_v22  ;;  %v431_v5 = vand.u32 4294901760, %v430_v58  ;;  %v438_v6 = vand.u32 4294901760, %v437_v59  ;;  %v451_v7 = vsub.f32 %v1782_v42, %v450_v60 }
  0x12   : > { %1440 = vmatpush3.bf16.msra.mxu1 %v1718_v19  ;;  %1512 = vmatpush3.bf16.msra.mxu0 %v1718_v19  ;;  %v1856_v8 = vsub.f32 %v1730_v24, %v360_v29  ;;  %v1859_v9 = vsub.f32 %v1735_v25, %v363_v30  ;;  %v1529_v10 = vpack.c.bf16 %v436_v50, %v429_v49  ;;  %v445_v15 = vand.u32 4294901760, %v444_v0 }
  0x13   : > { %v311_v27 = vadd.f32 %v1115_v23, %v303_v26  ;;  %1441 = vmatprep.subr.bf16.mxu1 %v1605_v3  ;;  %1513 = vmatprep.subr.bf16.mxu0 %v1605_v3  ;;  %v458_v16 = vsub.f32 %v1812_v51, %v457_v1  ;;  %v465_v17 = vsub.f32 %v1815_v52, %v464_v2  ;;  %v452_v20 = vand.u32 4294901760, %v451_v7 }
  0x14   : > { %v1457_v18 = vpack.c.bf16 %v438_v6, %v431_v5  ;;  %v471_v21 = vand.u32 4294901760, %v1835_v61  ;;  %v478_v22 = vand.u32 4294901760, %v1838_v62  ;;  %v1872_v23 = vsub.f32 %v1748_v31, %v366_v37 }
  0x15   : > { %v1757_v34 = vand.u32 4294901760, %v311_v27  ;;  %v1877_v24 = vsub.f32 %v1753_v32, %v369_v38  ;;  %v1532_v25 = vpack.c.bf16 %v450_v60, %v443_v56  ;;  %v459_v26 = vand.u32 4294901760, %v458_v16 }
  0x16   : > { %1443 = vmatpush3.bf16.msra.mxu1 %v1739_v28  ;;  %1515 = vmatpush3.bf16.msra.mxu0 %v1739_v28  ;;  %v485_v29 = vand.u32 4294901760, %v1856_v8  ;;  %v1460_v30 = vpack.c.bf16 %v452_v20, %v445_v15  ;;  %v472_v49 = vsub.f32 %v1835_v61, %v471_v21  ;;  %v479_v31 = vsub.f32 %v1838_v62, %v478_v22 }
  0x17   : > { %1444 = vmatprep.subr.bf16.mxu1 %v1605_v3  ;;  %1516 = vmatprep.subr.bf16.mxu0 %v1605_v3  ;;  %v1786_v44 = vsub.f32 %v311_v27, %v1757_v34  ;;  %v466_v27 = vand.u32 4294901760, %v465_v17  ;;  %v492_v37 = vand.u32 4294901760, %v1859_v9  ;;  %v1888_v32 = vsub.f32 %v1770_v39, %v372_v43 }
  0x18   : > { %v1893_v38 = vsub.f32 %v1777_v40, %v375_v46  ;;  %v1535_v50 = vpack.c.bf16 %v464_v2, %v457_v1  ;;  %v499_v56 = vand.u32 4294901760, %v1872_v23  ;;  %v506_v58 = vand.u32 4294901760, %v1877_v24 }
  0x19   : > { %v418_v55 = vand.u32 4294901760, %v1786_v44  ;;  %v1463_v39 = vpack.c.bf16 %v466_v27, %v459_v26  ;;  %v473_v43 = vand.u32 4294901760, %v472_v49  ;;  %v480_v59 = vand.u32 4294901760, %v479_v31 }
  0x1a   : > { %1446 = vmatpush3.bf16.msra.mxu1 %v1763_v36  ;;  %1518 = vmatpush3.bf16.msra.mxu0 %v1763_v36  ;;  %v493_v40 = vsub.f32 %v1859_v9, %v492_v37  ;;  %v1908_v46 = vsub.f32 %v1800_v47, %v378_v53  ;;  %v1913_v60 = vsub.f32 %v1805_v48, %v381_v54  ;;  %v513_v7 = vand.u32 4294901760, %v1888_v32 }
  0x1b   : > { %1447 = vmatprep.subr.bf16.mxu1 %v1605_v3  ;;  %1519 = vmatprep.subr.bf16.mxu0 %v1605_v3  ;;  %v419_v63 = vsub.f32 %v1786_v44, %v418_v55  ;;  %v500_v1 = vsub.f32 %v1872_v23, %v499_v56  ;;  %v507_v2 = vsub.f32 %v1877_v24, %v506_v58  ;;  %v520_v47 = vand.u32 4294901760, %v1893_v38 }
  0x1c   : > { %v1466_v5 = vpack.c.bf16 %v480_v59, %v473_v43  ;;  %v494_v6 = vand.u32 4294901760, %v493_v40  ;;  %v1541_v48 = vpack.c.bf16 %v492_v37, %v485_v29  ;;  %v514_v15 = vsub.f32 %v1888_v32, %v513_v7 }
  0x1d   : > { %v420_v14 = vand.u32 4294901760, %v419_v63  ;;  %v1538_v63 = vpack.c.bf16 %v478_v22, %v471_v21  ;;  %v501_v53 = vand.u32 4294901760, %v500_v1  ;;  %v508_v54 = vand.u32 4294901760, %v507_v2 }
  0x1e   : > { %1449 = vmatpush3.bf16.msra.mxu1 %v1794_v45  ;;  %1521 = vmatpush3.bf16.msra.mxu0 %v1794_v45  ;;  %v521_v16 = vsub.f32 %v1893_v38, %v520_v47  ;;  %v534_v17 = vand.u32 4294901760, %v1913_v60  ;;  %v1544_v20 = vpack.c.bf16 %v506_v58, %v499_v56  ;;  %v515_v21 = vand.u32 4294901760, %v514_v15 }
  0x1f   : > { %1450 = vmatprep.subr.bf16.mxu1 %v1605_v3  ;;  %1522 = vmatprep.subr.bf16.mxu0 %v1605_v3 }
  0x20   : > { %v522_v22 = vand.u32 4294901760, %v521_v16  ;;  %v535_v26 = vsub.f32 %v1913_v60, %v534_v17 }
  0x22   : > { %1452 = vmatpush3.bf16.msra.mxu1 %v1827_v57  ;;  %1524 = vmatpush3.bf16.msra.mxu0 %v1827_v57  ;;  %v1475_v27 = vpack.c.bf16 %v522_v22, %v515_v21  ;;  %v536_v49 = vand.u32 4294901760, %v535_v26 }
  0x23   : > { %1453 = vmatprep.subr.bf16.mxu1 %v1605_v3  ;;  %1525 = vmatprep.subr.bf16.mxu0 %v1605_v3 }
  0x26   : > { %1455 = vmatpush3.bf16.msra.mxu1 %v1850_v4  ;;  %1527 = vmatpush3.bf16.msra.mxu0 %v1850_v4 }
  0x27   : > { %1456 = vmatprep.subr.bf16.mxu1 %v1605_v3  ;;  %1528 = vmatprep.subr.bf16.mxu0 %v1605_v3 }
  0x29   : > { %1255 = vmatmul.mubr.f32.vlgmr.msra.gmra.mrb[0].mxu1 %v420_v14  ;;  %1360 = vmatmul.mubr.f32.vlgmr.msra.gmra.mrb[0].mxu0 %v418_v55  ;;  %v486_v55 = vsub.f32 %v1856_v8, %v485_v29  ;;  %v1547_v29 = vpack.c.bf16 %v520_v47, %v513_v7 }
  0x2a   : > { %1458 = vmatpush3.bf16.msra.mxu1 %v1457_v18  ;;  %1530 = vmatpush3.bf16.msra.mxu0 %v1529_v10  ;;  %v527_v10 = vand.u32 4294901760, %v1908_v46  ;;  %v1472_v18 = vpack.c.bf16 %v508_v54, %v501_v53 }
  0x2b   : > { %1459 = vmatprep.subr.bf16.mxu1 %v1605_v3  ;;  %1531 = vmatprep.subr.bf16.mxu0 %v1605_v3  ;;  %v487_v0 = vand.u32 4294901760, %v486_v55  ;;  %v1484_v55 = vpack.c.bf16 %v1782_v42, %v1780_v41 }
  0x2c   : > { %1289 = vmatprep.mubr.msk.f32.mxu1 %vm1606_vm0, %v1607_v11  ;;  %1394 = vmatprep.mubr.msk.f32.mxu0 %vm1606_vm0, %v1607_v11  ;;  %v1550_v37 = vpack.c.bf16 %v534_v17, %v527_v10 }
  0x2d   : > { %v1469_v14 = vpack.c.bf16 %v494_v6, %v487_v0 }
  0x2e   : > { %1461 = vmatpush3.bf16.msra.mxu1 %v1460_v30  ;;  %1533 = vmatpush3.bf16.msra.mxu0 %v1532_v25  ;;  %v528_v25 = vsub.f32 %v1908_v46, %v527_v10 }
  0x2f   : > { %1462 = vmatprep.subr.bf16.mxu1 %v1605_v3  ;;  %1534 = vmatprep.subr.bf16.mxu0 %v1605_v3 }
  0x30   : > { %v529_v30 = vand.u32 4294901760, %v528_v25 }
  0x32   : > { %1464 = vmatpush3.bf16.msra.mxu1 %v1463_v39  ;;  %1536 = vmatpush3.bf16.msra.mxu0 %v1535_v50  ;;  %v1478_v31 = vpack.c.bf16 %v536_v49, %v529_v30  ;;  %v1481_v50 = vpack.c.bf16 %v1759_v35, %v1755_v33  ;;  %v1487_v33 = vpack.c.bf16 %v1815_v52, %v1812_v51  ;;  %v1116_v35 = vld [vmem:[%s2003_s2] ss:$0 sm:$0xff] }
  0x33   : > { %1465 = vmatprep.subr.bf16.mxu1 %v1605_v3  ;;  %1537 = vmatprep.subr.bf16.mxu0 %v1605_v3 }
  0x36   : > { %1467 = vmatpush3.bf16.msra.mxu1 %v1466_v5  ;;  %1539 = vmatpush3.bf16.msra.mxu0 %v1538_v63 }
  0x37   : > { %1468 = vmatprep.subr.bf16.mxu1 %v1605_v3  ;;  %1540 = vmatprep.subr.bf16.mxu0 %v1605_v3 }
  0x3a   : > { %1470 = vmatpush3.bf16.msra.mxu1 %v1469_v14  ;;  %1542 = vmatpush3.bf16.msra.mxu0 %v1541_v48 }
  0x3b   : > { %1471 = vmatprep.subr.bf16.mxu1 %v1605_v3  ;;  %1543 = vmatprep.subr.bf16.mxu0 %v1605_v3 }
  0x3e   : > { %1473 = vmatpush3.bf16.msra.mxu1 %v1472_v18  ;;  %1545 = vmatpush3.bf16.msra.mxu0 %v1544_v20 }
  0x3f   : > { %1474 = vmatprep.subr.bf16.mxu1 %v1605_v3  ;;  %1546 = vmatprep.subr.bf16.mxu0 %v1605_v3 }
  0x42   : > { %1476 = vmatpush3.bf16.msra.mxu1 %v1475_v27  ;;  %1548 = vmatpush3.bf16.msra.mxu0 %v1547_v29 }
  0x43   : > { %1477 = vmatprep.subr.bf16.mxu1 %v1605_v3  ;;  %1549 = vmatprep.subr.bf16.mxu0 %v1605_v3 }
  0x46   : > { %1479 = vmatpush3.bf16.msra.mxu1 %v1478_v31  ;;  %1551 = vmatpush3.bf16.msra.mxu0 %v1550_v37 }
  0x47   : > { %1480 = vmatprep.subr.bf16.mxu1 %v1605_v3  ;;  %1552 = vmatprep.subr.bf16.mxu0 %v1605_v3 }
  0x49   : > { %1290 = vmatmul.mubr.f32.vlgmr.msra.gmra.mrb[0].mxu1 %v1757_v34  ;;  %1395 = vmatmul.mubr.f32.vlgmr.msra.gmra.mrb[0].mxu0 %v1757_v34 }
  0x4a   : > { %1482 = vmatpush3.bf16.msra.mxu1 %v1481_v50  ;;  %1554 = vmatpush3.bf16.msra.mxu0 %v1687_v12  ;;  %v1490_v12 = vpack.c.bf16 %v1838_v62, %v1835_v61 }
  0x4b   : > { %1483 = vmatprep.subr.bf16.mxu1 %v1605_v3  ;;  %1555 = vmatprep.subr.bf16.mxu0 %v1605_v3 }
  0x4c   : > { %1324 = vmatprep.mubr.msk.f32.mxu1 %vm1606_vm0, %v1607_v11  ;;  %1429 = vmatprep.mubr.msk.f32.mxu0 %vm1606_vm0, %v1607_v11  ;;  %v1493_v11 = vpack.c.bf16 %v1859_v9, %v1856_v8 }
  0x4e   : > { %1485 = vmatpush3.bf16.msra.mxu1 %v1484_v55  ;;  %1557 = vmatpush3.bf16.msra.mxu0 %v1691_v13  ;;  %v1496_v13 = vpack.c.bf16 %v1877_v24, %v1872_v23 }
  0x4f   : > { %1486 = vmatprep.subr.bf16.mxu1 %v1605_v3  ;;  %1558 = vmatprep.subr.bf16.mxu0 %v1605_v3 }
  0x52   : > { %1488 = vmatpush3.bf16.msra.mxu1 %v1487_v33  ;;  %1560 = vmatpush3.bf16.msra.mxu0 %v1718_v19  ;;  %v1499_v19 = vpack.c.bf16 %v1893_v38, %v1888_v32 }
  0x53   : > { %1489 = vmatprep.subr.bf16.mxu1 %v1605_v3  ;;  %1561 = vmatprep.subr.bf16.mxu0 %v1605_v3 }
  0x56   : > { %1491 = vmatpush3.bf16.msra.mxu1 %v1490_v12  ;;  %1563 = vmatpush3.bf16.msra.mxu0 %v1739_v28  ;;  %v1502_v28 = vpack.c.bf16 %v1913_v60, %v1908_v46 }
  0x57   : > { %1492 = vmatprep.subr.bf16.mxu1 %v1605_v3  ;;  %1564 = vmatprep.subr.bf16.mxu0 %v1605_v3 }
  0x5a   : > { %1494 = vmatpush3.bf16.msra.mxu1 %v1493_v11  ;;  %1566 = vmatpush3.bf16.msra.mxu0 %v1763_v36 }
  0x5b   : > { %1495 = vmatprep.subr.bf16.mxu1 %v1605_v3  ;;  %1567 = vmatprep.subr.bf16.mxu0 %v1605_v3 }
  0x5e   : > { %1497 = vmatpush3.bf16.msra.mxu1 %v1496_v13  ;;  %1569 = vmatpush3.bf16.msra.mxu0 %v1794_v45 }
  0x5f   : > { %1498 = vmatprep.subr.bf16.mxu1 %v1605_v3  ;;  %1570 = vmatprep.subr.bf16.mxu0 %v1605_v3 }
  0x62   : > { %1500 = vmatpush3.bf16.msra.mxu1 %v1499_v19  ;;  %1572 = vmatpush3.bf16.msra.mxu0 %v1827_v57 }
  0x63   : > { %1501 = vmatprep.subr.bf16.mxu1 %v1605_v3  ;;  %1573 = vmatprep.subr.bf16.mxu0 %v1605_v3 }
  0x66   : > { %1503 = vmatpush3.bf16.msra.mxu1 %v1502_v28  ;;  %1575 = vmatpush3.bf16.msra.mxu0 %v1850_v4 }
  0x69   : > { %1325 = vmatmul.mubr.f32.vlgmr.msra.gmra.mrb[0].mxu1 %v1786_v44  ;;  %1430 = vmatmul.mubr.f32.vlgmr.msra.gmra.mrb[0].mxu0 %v1757_v34 }
 0x13c   : > { %v677_v36 = vpop.f32.mrb[0].mxu1  ;;  %v972_v41 = vpop.f32.mrb[0].mxu0 }
 0x13d   : > { %v1576_v42 = vadd.f32 %v1116_v35, %v677_v36  ;;  %v1326_v45 = vpop.f32.mrb[1].mxu1  ;;  %v1431_v51 = vpop.f32.mrb[1].mxu0 }
 0x13f   : > { %v1577_v3 = vadd.f32 %v1576_v42, %v972_v41 }
 0x141   : > { %976 = vst [vmem:[%s286_s27] sm:$0xff] %v1577_v3  ;;  %v984_v34 = vsub.f32 %v1577_v3, %v1116_v35 }
 0x143   : > { %986 = vst [vmem:[%s290_s30] sm:$0xff] %v984_v34  ;;  %v987_v44 = vmul.f32 %v984_v34, %v984_v34 }
 0x145   : > { %989 = vst [vmem:[%s294_s10] sm:$0xff] %v987_v44 }
 0x146 PF: > { %s18_s24 = sadd.s32 1, %s1603_s24  }
 0x147   : > { %p15_p4 = scmp.ge.s32.totalorder %s18_s24, 4  }
 0x149   :  { %17 = sbr.rel (!%p15_p4) target bundleno = 1 (0x1), region = 94 }

// kernel: residual_mlp_block.3
= control target key start
LH: loop header
LB: loop body
LE: loop exit
PB: predicated region body
PF: predicated region fallthrough
CT: control target
= control target key end

     0   :  { %s1622_s24 = smov 0   ;;  %s1965_s0 = inlined_call_operand.vmem [shape: f32[16,128], index: 0, kind: input, shape index: {}]   ;;  %s1966_s1 = inlined_call_operand.vmem [shape: f32[128,128], index: 1, kind: input, shape index: {}]   ;;  %s1967_s2 = inlined_call_operand.vmem [shape: f32[1,128], index: 2, kind: input, shape index: {}]   ;;  %s1968_s3 = inlined_call_operand.vmem [shape: f32[1,128], index: 3, kind: input, shape index: {}]   ;;  %s1969_s4 = inlined_call_operand.vmem [shape: f32[1,128], index: 4, kind: input, shape index: {}]   ;;  %s1970_s5 = inlined_call_operand.vmem [shape: f32[16,128], index: 5, kind: output, shape index: {0}]   ;;  %s1971_s6 = inlined_call_operand.vmem [shape: f32[16,128], index: 6, kind: output, shape index: {1}]   ;;  %s1972_s7 = inlined_call_operand.vmem [shape: f32[16,128], index: 7, kind: output, shape index: {2}]  }
   0x1 LB: > { %s1082_s3 = sadd.s32 4294967295, %s1577_s24   ;;  %p1086_p0 = scmp.ge.s32.totalorder %s1577_s24, 1  ;;  %s1577_s24 = sphi %s1622_s24, %s18_s24  }
   0x2   : > { %p241_p1 = scmp.lt.s32.totalorder %s1577_s24, 3 }
   0x4   : > { %p242_p2 = pnand %p1086_p0, %p241_p1 }
   0x5   : > { %v296_v0 = vld [vmem:[%s1966_s1] sm:$0xff] (!%p242_p2)  ;;  %v297_v1 = vld [vmem:[%s1966_s1 + $0x8] sm:$0xff] (!%p242_p2)  ;;  %v298_v2 = vld [vmem:[%s1966_s1 + $0x10] sm:$0xff] (!%p242_p2)  ;;  %v1579_v3 = vmov (!%p242_p2), 0.0|0.0   ;;  %vm1580_vm0 = vmmov (!%p242_p2), 0   ;;  %v1581_v11 = vmov (!%p242_p2), 0.0  }
   0x6   : > { %245 = sbr.rel (%p242_p2) target bundleno = 326 (0x146), region = 40  ;;  %1406 = vmatprep.subr.bf16.mxu1 (!%p242_p2), %v1579_v3  ;;  %1478 = vmatprep.subr.bf16.mxu0 (!%p242_p2), %v1579_v3  ;;  %v320_v4 = vand.u32 (!%p242_p2), 4294901760, %v296_v0  ;;  %v323_v5 = vand.u32 (!%p242_p2), 4294901760, %v297_v1  ;;  %v299_v6 = vld [vmem:[%s1966_s1 + $0x18] sm:$0xff] (!%p242_p2)  ;;  %v326_v7 = vand.u32 (!%p242_p2), 4294901760, %v298_v2  ;;  %v1647_v9 = vld [vmem:[%s1966_s1 + $0x20] sm:$0xff] (!%p242_p2) }
   0x7   : > { %v329_v8 = vand.u32 (!%p242_p2), 4294901760, %v299_v6  ;;  %v1652_v10 = vld [vmem:[%s1966_s1 + $0x28] sm:$0xff] (!%p242_p2)  ;;  %1228 = vmatprep.mubr.msk.f32.mxu1 (!%p242_p2), %vm1580_vm0, %v1581_v11  ;;  %1333 = vmatprep.mubr.msk.f32.mxu0 (!%p242_p2), %vm1580_vm0, %v1581_v11  ;;  %p279_p3 = scmp.lt.s32.totalorder (!%p242_p2), %s1082_s3, 1  ;;  %v332_v14 = vand.u32 (!%p242_p2), 4294901760, %v1647_v9  ;;  %v1671_v16 = vld [vmem:[%s1966_s1 + $0x30] sm:$0xff] (!%p242_p2)  ;;  %v1676_v17 = vld [vmem:[%s1966_s1 + $0x38] sm:$0xff] (!%p242_p2) }
   0x8   : > { %v1658_v12 = vpack.c.bf16 (!%p242_p2), %v323_v5, %v320_v4  ;;  %v335_v15 = vand.u32 (!%p242_p2), 4294901760, %v1652_v10  ;;  %v338_v19 = vand.u32 (!%p242_p2), 4294901760, %v1671_v16  ;;  %v341_v20 = vand.u32 (!%p242_p2), 4294901760, %v1676_v17  ;;  %v1691_v21 = vld [vmem:[%s1966_s1 + $0x40] sm:$0xff] (!%p242_p2)  ;;  %v1696_v22 = vld [vmem:[%s1966_s1 + $0x48] sm:$0xff] (!%p242_p2)  ;;  %v1713_v27 = vld [vmem:[%s1966_s1 + $0x50] sm:$0xff] (!%p242_p2) }
   0x9   : > { %v1662_v13 = vpack.c.bf16 (!%p242_p2), %v329_v8, %v326_v7  ;;  %v344_v24 = vand.u32 (!%p242_p2), 4294901760, %v1691_v21  ;;  %v347_v25 = vand.u32 (!%p242_p2), 4294901760, %v1696_v22  ;;  %v1718_v28 = vld [vmem:[%s1966_s1 + $0x58] sm:$0xff] (!%p242_p2)  ;;  %v1720_v29 = vsub.f32 (!%p242_p2), %v296_v0, %v320_v4  ;;  %v1735_v35 = vld [vmem:[%s1966_s1 + $0x60] sm:$0xff] (!%p242_p2)  ;;  %v1742_v36 = vld [vmem:[%s1966_s1 + $0x68] sm:$0xff] (!%p242_p2) }
   0xa   : > { %1408 = vmatpush3.bf16.msra.mxu1 (!%p242_p2), %v1658_v12  ;;  %1480 = vmatpush3.bf16.msra.mxu0 (!%p242_p2), %v1658_v12  ;;  %v1682_v18 = vpack.c.bf16 (!%p242_p2), %v335_v15, %v332_v14  ;;  %v1704_v23 = vpack.c.bf16 (!%p242_p2), %v341_v20, %v338_v19  ;;  %v1724_v31 = vsub.f32 (!%p242_p2), %v297_v1, %v323_v5  ;;  %v350_v33 = vand.u32 (!%p242_p2), 4294901760, %v1713_v27  ;;  %v1764_v43 = vld [vmem:[%s1966_s1 + $0x70] sm:$0xff] (!%p242_p2)  ;;  %v1769_v44 = vld [vmem:[%s1966_s1 + $0x78] sm:$0xff] (!%p242_p2) }
   0xb   : > { %1409 = vmatprep.subr.bf16.mxu1 (!%p242_p2), %v1579_v3  ;;  %1481 = vmatprep.subr.bf16.mxu0 (!%p242_p2), %v1579_v3  ;;  %v1728_v32 = vpack.c.bf16 (!%p242_p2), %v347_v25, %v344_v24  ;;  %v353_v34 = vand.u32 (!%p242_p2), 4294901760, %v1718_v28  ;;  %v1744_v37 = vsub.f32 (!%p242_p2), %v298_v2, %v326_v7  ;;  %v1746_v38 = vsub.f32 (!%p242_p2), %v299_v6, %v329_v8 }
   0xc   : > { %v356_v39 = vand.u32 (!%p242_p2), 4294901760, %v1735_v35  ;;  %v359_v42 = vand.u32 (!%p242_p2), 4294901760, %v1742_v36  ;;  %v413_v45 = vand.u32 (!%p242_p2), 4294901760, %v1720_v29  ;;  %v420_v46 = vand.u32 (!%p242_p2), 4294901760, %v1724_v31 }
   0xd   : > { %s1974_s3 = smov (!%p279_p3, %s1082_s3), 1  ;;  %v1758_v41 = vpack.c.bf16 %v353_v34, %v350_v33  ;;  %v1776_v47 = vsub.f32 %v1647_v9, %v332_v14  ;;  %v1779_v48 = vsub.f32 %v1652_v10, %v335_v15  ;;  %v362_v49 = vand.u32 4294901760, %v1764_v43 }
   0xe   : > { %s1678_s17 = sshll.u32 %s1974_s3, 3  ;;  %1411 = vmatpush3.bf16.msra.mxu1 %v1662_v13  ;;  %1483 = vmatpush3.bf16.msra.mxu0 %v1662_v13  ;;  %v365_v50 = vand.u32 4294901760, %v1769_v44  ;;  %v427_v52 = vand.u32 4294901760, %v1744_v37  ;;  %v1791_v53 = vpack.c.bf16 %v359_v42, %v356_v39  ;;  %v414_v54 = vsub.f32 %v1720_v29, %v413_v45 }
   0xf   : > { %1412 = vmatprep.subr.bf16.mxu1 %v1579_v3  ;;  %1484 = vmatprep.subr.bf16.mxu0 %v1579_v3  ;;  %s282_s3 = scalar_lea.vmem %s1965_s0, %s1678_s17  ;;  %v421_v55 = vsub.f32 %v1724_v31, %v420_v46  ;;  %v434_v56 = vand.u32 4294901760, %v1746_v38  ;;  %v1799_v57 = vsub.f32 %v1671_v16, %v338_v19  ;;  %v1802_v58 = vsub.f32 %v1676_v17, %v341_v20  ;;  %s286_s18 = scalar_lea.vmem %s1970_s5, %s1678_s17 }
  0x10   : > { %v295_v26 = vld [vmem:[%s282_s3] sm:$0xff]  ;;  %v428_v60 = vsub.f32 %v1744_v37, %v427_v52  ;;  %v441_v61 = vand.u32 4294901760, %v1776_v47  ;;  %v448_v62 = vand.u32 4294901760, %v1779_v48  ;;  %v1814_v63 = vpack.c.bf16 %v365_v50, %v362_v49  ;;  %s290_s21 = scalar_lea.vmem %s1971_s6, %s1678_s17  ;;  %s294_s3 = scalar_lea.vmem %s1972_s7, %s1678_s17 }
  0x11   : > { %v1722_v30 = vand.u32 4294901760, %v295_v26  ;;  %v415_v0 = vand.u32 4294901760, %v414_v54  ;;  %v422_v1 = vand.u32 4294901760, %v421_v55  ;;  %v435_v2 = vsub.f32 %v1746_v38, %v434_v56 }
  0x12   : > { %1414 = vmatpush3.bf16.msra.mxu1 %v1682_v18  ;;  %1486 = vmatpush3.bf16.msra.mxu0 %v1682_v18  ;;  %v1820_v4 = vsub.f32 %v1691_v21, %v344_v24  ;;  %v1823_v5 = vsub.f32 %v1696_v22, %v347_v25  ;;  %v1503_v6 = vpack.c.bf16 %v420_v46, %v413_v45  ;;  %v429_v8 = vand.u32 4294901760, %v428_v60 }
  0x13   : > { %1415 = vmatprep.subr.bf16.mxu1 %v1579_v3  ;;  %1487 = vmatprep.subr.bf16.mxu0 %v1579_v3  ;;  %v1750_v40 = vsub.f32 %v295_v26, %v1722_v30  ;;  %v442_v9 = vsub.f32 %v1776_v47, %v441_v61  ;;  %v449_v10 = vsub.f32 %v1779_v48, %v448_v62  ;;  %v436_v15 = vand.u32 4294901760, %v435_v2 }
  0x14   : > { %v1431_v14 = vpack.c.bf16 %v422_v1, %v415_v0  ;;  %v455_v16 = vand.u32 4294901760, %v1799_v57  ;;  %v462_v17 = vand.u32 4294901760, %v1802_v58  ;;  %v1836_v19 = vsub.f32 %v1713_v27, %v350_v33 }
  0x15   : > { %v402_v51 = vand.u32 4294901760, %v1750_v40  ;;  %v1841_v20 = vsub.f32 %v1718_v28, %v353_v34  ;;  %v1506_v21 = vpack.c.bf16 %v434_v56, %v427_v52  ;;  %v443_v22 = vand.u32 4294901760, %v442_v9 }
  0x16   : > { %1417 = vmatpush3.bf16.msra.mxu1 %v1704_v23  ;;  %1489 = vmatpush3.bf16.msra.mxu0 %v1704_v23  ;;  %v450_v24 = vand.u32 4294901760, %v449_v10  ;;  %v469_v25 = vand.u32 4294901760, %v1820_v4  ;;  %v1434_v26 = vpack.c.bf16 %v436_v15, %v429_v8  ;;  %v456_v45 = vsub.f32 %v1799_v57, %v455_v16 }
  0x17   : > { %1418 = vmatprep.subr.bf16.mxu1 %v1579_v3  ;;  %1490 = vmatprep.subr.bf16.mxu0 %v1579_v3  ;;  %v403_v59 = vsub.f32 %v1750_v40, %v402_v51  ;;  %v463_v27 = vsub.f32 %v1802_v58, %v462_v17  ;;  %v476_v33 = vand.u32 4294901760, %v1823_v5  ;;  %v1852_v28 = vsub.f32 %v1735_v35, %v356_v39 }
  0x18   : > { %v1857_v34 = vsub.f32 %v1742_v36, %v359_v42  ;;  %v1437_v46 = vpack.c.bf16 %v450_v24, %v443_v22  ;;  %v470_v52 = vsub.f32 %v1820_v4, %v469_v25  ;;  %v483_v54 = vand.u32 4294901760, %v1836_v19 }
  0x19   : > { %v404_v7 = vand.u32 4294901760, %v403_v59  ;;  %v457_v35 = vand.u32 4294901760, %v456_v45  ;;  %v464_v39 = vand.u32 4294901760, %v463_v27  ;;  %v477_v55 = vsub.f32 %v1823_v5, %v476_v33 }
  0x1a   : > { %1420 = vmatpush3.bf16.msra.mxu1 %v1728_v32  ;;  %1492 = vmatpush3.bf16.msra.mxu0 %v1728_v32  ;;  %v490_v36 = vand.u32 4294901760, %v1841_v20  ;;  %v1872_v42 = vsub.f32 %v1764_v43, %v362_v49  ;;  %v1877_v56 = vsub.f32 %v1769_v44, %v365_v50  ;;  %v1512_v59 = vpack.c.bf16 %v462_v17, %v455_v16 }
  0x1b   : > { %1421 = vmatprep.subr.bf16.mxu1 %v1579_v3  ;;  %1493 = vmatprep.subr.bf16.mxu0 %v1579_v3  ;;  %v471_v60 = vand.u32 4294901760, %v470_v52  ;;  %v1440_v0 = vpack.c.bf16 %v464_v39, %v457_v35  ;;  %v478_v1 = vand.u32 4294901760, %v477_v55  ;;  %v504_v43 = vand.u32 4294901760, %v1857_v34 }
  0x1c   : > { %v491_v2 = vsub.f32 %v1841_v20, %v490_v36  ;;  %v1515_v44 = vpack.c.bf16 %v476_v33, %v469_v25  ;;  %v518_v10 = vand.u32 4294901760, %v1877_v56 }
  0x1d   : > { %v505_v9 = vsub.f32 %v1857_v34, %v504_v43 }
  0x1e   : > { %1423 = vmatpush3.bf16.msra.mxu1 %v1758_v41  ;;  %1495 = vmatpush3.bf16.msra.mxu0 %v1758_v41  ;;  %v492_v8 = vand.u32 4294901760, %v491_v2  ;;  %v519_v22 = vsub.f32 %v1877_v56, %v518_v10 }
  0x1f   : > { %1424 = vmatprep.subr.bf16.mxu1 %v1579_v3  ;;  %1496 = vmatprep.subr.bf16.mxu0 %v1579_v3  ;;  %v506_v17 = vand.u32 4294901760, %v505_v9 }
  0x20   : > { %v520_v45 = vand.u32 4294901760, %v519_v22 }
  0x22   : > { %1426 = vmatpush3.bf16.msra.mxu1 %v1791_v53  ;;  %1498 = vmatpush3.bf16.msra.mxu0 %v1791_v53 }
  0x23   : > { %1427 = vmatprep.subr.bf16.mxu1 %v1579_v3  ;;  %1499 = vmatprep.subr.bf16.mxu0 %v1579_v3 }
  0x26   : > { %1429 = vmatpush3.bf16.msra.mxu1 %v1814_v63  ;;  %1501 = vmatpush3.bf16.msra.mxu0 %v1814_v63 }
  0x27   : > { %1430 = vmatprep.subr.bf16.mxu1 %v1579_v3  ;;  %1502 = vmatprep.subr.bf16.mxu0 %v1579_v3 }
  0x29   : > { %1229 = vmatmul.mubr.f32.vlgmr.msra.gmra.mrb[0].mxu1 %v404_v7  ;;  %1334 = vmatmul.mubr.f32.vlgmr.msra.gmra.mrb[0].mxu0 %v402_v51  ;;  %v1509_v51 = vpack.c.bf16 %v448_v62, %v441_v61  ;;  %v484_v61 = vsub.f32 %v1836_v19, %v483_v54  ;;  %v497_v62 = vand.u32 4294901760, %v1852_v28  ;;  %v1443_v7 = vpack.c.bf16 %v478_v1, %v471_v60 }
  0x2a   : > { %1432 = vmatpush3.bf16.msra.mxu1 %v1431_v14  ;;  %1504 = vmatpush3.bf16.msra.mxu0 %v1503_v6  ;;  %v511_v6 = vand.u32 4294901760, %v1872_v42  ;;  %v1518_v14 = vpack.c.bf16 %v490_v36, %v483_v54 }
  0x2b   : > { %1433 = vmatprep.subr.bf16.mxu1 %v1579_v3  ;;  %1505 = vmatprep.subr.bf16.mxu0 %v1579_v3  ;;  %v485_v49 = vand.u32 4294901760, %v484_v61  ;;  %v498_v50 = vsub.f32 %v1852_v28, %v497_v62  ;;  %v1521_v25 = vpack.c.bf16 %v504_v43, %v497_v62 }
  0x2c   : > { %1263 = vmatprep.mubr.msk.f32.mxu1 %vm1580_vm0, %v1581_v11  ;;  %1368 = vmatprep.mubr.msk.f32.mxu0 %vm1580_vm0, %v1581_v11  ;;  %v1524_v33 = vpack.c.bf16 %v518_v10, %v511_v6 }
  0x2d   : > { %v499_v15 = vand.u32 4294901760, %v498_v50  ;;  %v1446_v16 = vpack.c.bf16 %v492_v8, %v485_v49 }
  0x2e   : > { %1435 = vmatpush3.bf16.msra.mxu1 %v1434_v26  ;;  %1507 = vmatpush3.bf16.msra.mxu0 %v1506_v21  ;;  %v512_v21 = vsub.f32 %v1872_v42, %v511_v6 }
  0x2f   : > { %1436 = vmatprep.subr.bf16.mxu1 %v1579_v3  ;;  %1508 = vmatprep.subr.bf16.mxu0 %v1579_v3  ;;  %v1449_v24 = vpack.c.bf16 %v506_v17, %v499_v15 }
  0x30   : > { %v513_v26 = vand.u32 4294901760, %v512_v21 }
  0x32   : > { %1438 = vmatpush3.bf16.msra.mxu1 %v1437_v46  ;;  %1510 = vmatpush3.bf16.msra.mxu0 %v1509_v51  ;;  %v1452_v27 = vpack.c.bf16 %v520_v45, %v513_v26  ;;  %v1455_v46 = vpack.c.bf16 %v1724_v31, %v1720_v29  ;;  %v1458_v51 = vpack.c.bf16 %v1746_v38, %v1744_v37  ;;  %v1091_v31 = vld [vmem:[%s1967_s2] ss:$0 sm:$0xff] }
  0x33   : > { %1439 = vmatprep.subr.bf16.mxu1 %v1579_v3  ;;  %1511 = vmatprep.subr.bf16.mxu0 %v1579_v3  ;;  %v1461_v29 = vpack.c.bf16 %v1779_v48, %v1776_v47 }
  0x36   : > { %1441 = vmatpush3.bf16.msra.mxu1 %v1440_v0  ;;  %1513 = vmatpush3.bf16.msra.mxu0 %v1512_v59 }
  0x37   : > { %1442 = vmatprep.subr.bf16.mxu1 %v1579_v3  ;;  %1514 = vmatprep.subr.bf16.mxu0 %v1579_v3 }
  0x3a   : > { %1444 = vmatpush3.bf16.msra.mxu1 %v1443_v7  ;;  %1516 = vmatpush3.bf16.msra.mxu0 %v1515_v44 }
  0x3b   : > { %1445 = vmatprep.subr.bf16.mxu1 %v1579_v3  ;;  %1517 = vmatprep.subr.bf16.mxu0 %v1579_v3 }
  0x3e   : > { %1447 = vmatpush3.bf16.msra.mxu1 %v1446_v16  ;;  %1519 = vmatpush3.bf16.msra.mxu0 %v1518_v14 }
  0x3f   : > { %1448 = vmatprep.subr.bf16.mxu1 %v1579_v3  ;;  %1520 = vmatprep.subr.bf16.mxu0 %v1579_v3 }
  0x42   : > { %1450 = vmatpush3.bf16.msra.mxu1 %v1449_v24  ;;  %1522 = vmatpush3.bf16.msra.mxu0 %v1521_v25 }
  0x43   : > { %1451 = vmatprep.subr.bf16.mxu1 %v1579_v3  ;;  %1523 = vmatprep.subr.bf16.mxu0 %v1579_v3 }
  0x46   : > { %1453 = vmatpush3.bf16.msra.mxu1 %v1452_v27  ;;  %1525 = vmatpush3.bf16.msra.mxu0 %v1524_v33 }
  0x47   : > { %1454 = vmatprep.subr.bf16.mxu1 %v1579_v3  ;;  %1526 = vmatprep.subr.bf16.mxu0 %v1579_v3 }
  0x49   : > { %1264 = vmatmul.mubr.f32.vlgmr.msra.gmra.mrb[0].mxu1 %v1722_v30  ;;  %1369 = vmatmul.mubr.f32.vlgmr.msra.gmra.mrb[0].mxu0 %v1722_v30 }
  0x4a   : > { %1456 = vmatpush3.bf16.msra.mxu1 %v1455_v46  ;;  %1528 = vmatpush3.bf16.msra.mxu0 %v1658_v12  ;;  %v1464_v12 = vpack.c.bf16 %v1802_v58, %v1799_v57 }
  0x4b   : > { %1457 = vmatprep.subr.bf16.mxu1 %v1579_v3  ;;  %1529 = vmatprep.subr.bf16.mxu0 %v1579_v3 }
  0x4c   : > { %1298 = vmatprep.mubr.msk.f32.mxu1 %vm1580_vm0, %v1581_v11  ;;  %1403 = vmatprep.mubr.msk.f32.mxu0 %vm1580_vm0, %v1581_v11  ;;  %v1467_v11 = vpack.c.bf16 %v1823_v5, %v1820_v4 }
  0x4e   : > { %1459 = vmatpush3.bf16.msra.mxu1 %v1458_v51  ;;  %1531 = vmatpush3.bf16.msra.mxu0 %v1662_v13  ;;  %v1470_v13 = vpack.c.bf16 %v1841_v20, %v1836_v19 }
  0x4f   : > { %1460 = vmatprep.subr.bf16.mxu1 %v1579_v3  ;;  %1532 = vmatprep.subr.bf16.mxu0 %v1579_v3 }
  0x52   : > { %1462 = vmatpush3.bf16.msra.mxu1 %v1461_v29  ;;  %1534 = vmatpush3.bf16.msra.mxu0 %v1682_v18  ;;  %v1473_v18 = vpack.c.bf16 %v1857_v34, %v1852_v28 }
  0x53   : > { %1463 = vmatprep.subr.bf16.mxu1 %v1579_v3  ;;  %1535 = vmatprep.subr.bf16.mxu0 %v1579_v3 }
  0x56   : > { %1465 = vmatpush3.bf16.msra.mxu1 %v1464_v12  ;;  %1537 = vmatpush3.bf16.msra.mxu0 %v1704_v23  ;;  %v1476_v23 = vpack.c.bf16 %v1877_v56, %v1872_v42 }
  0x57   : > { %1466 = vmatprep.subr.bf16.mxu1 %v1579_v3  ;;  %1538 = vmatprep.subr.bf16.mxu0 %v1579_v3 }
  0x5a   : > { %1468 = vmatpush3.bf16.msra.mxu1 %v1467_v11  ;;  %1540 = vmatpush3.bf16.msra.mxu0 %v1728_v32 }
  0x5b   : > { %1469 = vmatprep.subr.bf16.mxu1 %v1579_v3  ;;  %1541 = vmatprep.subr.bf16.mxu0 %v1579_v3 }
  0x5e   : > { %1471 = vmatpush3.bf16.msra.mxu1 %v1470_v13  ;;  %1543 = vmatpush3.bf16.msra.mxu0 %v1758_v41 }
  0x5f   : > { %1472 = vmatprep.subr.bf16.mxu1 %v1579_v3  ;;  %1544 = vmatprep.subr.bf16.mxu0 %v1579_v3 }
  0x62   : > { %1474 = vmatpush3.bf16.msra.mxu1 %v1473_v18  ;;  %1546 = vmatpush3.bf16.msra.mxu0 %v1791_v53 }
  0x63   : > { %1475 = vmatprep.subr.bf16.mxu1 %v1579_v3  ;;  %1547 = vmatprep.subr.bf16.mxu0 %v1579_v3 }
  0x66   : > { %1477 = vmatpush3.bf16.msra.mxu1 %v1476_v23  ;;  %1549 = vmatpush3.bf16.msra.mxu0 %v1814_v63 }
  0x69   : > { %1299 = vmatmul.mubr.f32.vlgmr.msra.gmra.mrb[0].mxu1 %v1750_v40  ;;  %1404 = vmatmul.mubr.f32.vlgmr.msra.gmra.mrb[0].mxu0 %v1722_v30 }
 0x13c   : > { %v661_v32 = vpop.f32.mrb[0].mxu1  ;;  %v956_v37 = vpop.f32.mrb[0].mxu0 }
 0x13d   : > { %v1550_v38 = vadd.f32 %v1091_v31, %v661_v32  ;;  %v1300_v41 = vpop.f32.mrb[1].mxu1  ;;  %v1405_v47 = vpop.f32.mrb[1].mxu0 }
 0x13f   : > { %v1551_v48 = vadd.f32 %v1550_v38, %v956_v37 }
 0x141   : > { %v960_v3 = vmax.f32 %v1551_v48, 0.0 }
 0x143   : > { %961 = vst [vmem:[%s286_s18] sm:$0xff] %v960_v3  ;;  %963 = vst [vmem:[%s290_s21] sm:$0xff] %v960_v3  ;;  %v964_v30 = vmul.f32 %v960_v3, %v960_v3 }
 0x145   : > { %966 = vst [vmem:[%s294_s3] sm:$0xff] %v964_v30 }
 0x146 PF: > { %s18_s24 = sadd.s32 1, %s1577_s24  }
 0x147   : > { %p15_p4 = scmp.ge.s32.totalorder %s18_s24, 4  }
 0x149   :  { %17 = sbr.rel (!%p15_p4) target bundleno = 1 (0x1), region = 94 }

</bundles_post_ra>
